<compile_context>
chip_gen: v6e
topology: v6e:2x2x1
jax: 0.10.0
libtpu: 0.0.40
codegen_flags: <defaults>
</compile_context>

<pallas_src>
import functools
import math

import jax
import jax.numpy as jnp
from jax.experimental import pallas as pl
from jax.experimental.pallas import tpu as pltpu

_SQRT2 = math.sqrt(2.0)
_QUARTER_PI = math.pi / 4.0
_MAX_LANE_TILE = 16 * 1024            # lane-tile cap (multiple of 128)


def _pe_add_kernel(pos_ref, x_ref, dt_ref, ph_ref, o_ref, *, fold):
    """pos_ref: SMEM int32[1]   slice start `pos` (scalar-prefetched)
       x_ref  : VMEM (TR, TL)   tile of x viewed as (S//k, k*B*D)
       dt_ref : VMEM (1, TL)    per-lane frequency term w_d (f32)
       ph_ref : VMEM (1, TL)    per-lane phase = off_lane * w_d + pi/4 (f32)
       o_ref  : VMEM (TR, TL)
       fold   : static k (rows folded into lanes)
    """
    tr = x_ref.shape[0]
    row0 = pl.program_id(1) * tr                       # row axis is the inner grid axis
    r = jax.lax.broadcasted_iota(jnp.int32, (tr, 1), 0) + row0
    # Original sequence position = pos + r*k + off_lane; the off_lane*w_d part
    # (plus the +pi/4 of the sin+cos fold) is pre-folded into ph_ref.
    p = (r * fold + pos_ref[0]).astype(jnp.float32)    # (TR, 1), exact int math
    angle = p * dt_ref[...] + ph_ref[...]              # (TR,1)*(1,TL)+(1,TL) -> (TR,TL)
    pe = _SQRT2 * jnp.sin(angle)                       # sin(a)+cos(a) == sqrt2*sin(a+pi/4)
    o_ref[...] = x_ref[...] + pe.astype(x_ref.dtype)


def _default_target_tile_bytes():
    # v7x: HBM ~3.2 TB/s makes per-step overhead proportionally expensive and
    # VMEM (64 MiB) still fits 8 MiB blocks; v5e/v6e plateau at ~4 MiB.
    try:
        kind = jax.devices()[0].device_kind.lower()
    except Exception:
        kind = ""
    if "v7" in kind or "7x" in kind:
        return 8 * 1024 * 1024
    return 4 * 1024 * 1024


def _fold_factor(S, L):
    """Rows folded into lanes so the output last dim is lane-dense (>=128)."""
    if L % 128 == 0 or L >= 1024:
        return 1
    divisors = [k for k in range(1, S + 1) if S % k == 0]
    for k in divisors:                       # prefer ~1024+ lanes, keep >= 8 rows
        if k * L >= 1024 and S // k >= 8:
            return k
    for k in divisors:                       # otherwise at least 128 lanes
        if k * L >= 128:
            return k
    return divisors[-1]


def _choose_tiles(n_rows, n_lanes, itemsize, target_bytes):
    # Native sublane packing: 8 for f32, 16 for bf16, 32 for int8/fp8.
    sub = max(8, 32 // itemsize)
    tl = n_lanes if n_lanes <= _MAX_LANE_TILE else _MAX_LANE_TILE
    tr = target_bytes // max(1, tl * itemsize)
    tr = max(sub, (tr // sub) * sub)
    if tr > n_rows:
        tr = n_rows
    # Keep >= 4 blocks when the problem allows it (v7x has 2 TCs; also enables
    # double-buffered pipelining).  Shrink the row tile rather than the grid.
    while pl.cdiv(n_rows, tr) * pl.cdiv(n_lanes, tl) < 4 and tr > sub:
        new_tr = max(sub, ((tr // 2) // sub) * sub)
        if new_tr == tr:
            break
        tr = new_tr
    return tr, tl


def positional_encoding(x, pos=0, *, max_len=5000, target_tile_bytes=None,
                        tile_override=None):
    """x: (seq_len, batch, d_model). Returns x + pe[pos:pos+seq_len] (eval-mode dropout)."""
    S, B, D = x.shape
    assert pos + S <= max_len, "slice exceeds max_len of the PE buffer"
    L = B * D
    k = _fold_factor(S, L)
    R, W = S // k, k * L
    itemsize = jnp.dtype(x.dtype).itemsize

    if target_tile_bytes is None:
        target_tile_bytes = _default_target_tile_bytes()
    if tile_override is not None:
        tr, tl = tile_override
        tr, tl = min(tr, R), min(tl, W)
    else:
        tr, tl = _choose_tiles(R, W, itemsize, target_tile_bytes)
    grid = (pl.cdiv(W, tl), pl.cdiv(R, tr))        # lane axis OUTERMOST

    # Per-lane frequency + phase rows (tiny; computed once, like the PyTorch
    # registered buffer).  Lane layout after folding: lane = r_local*L + b*D + d.
    div_term = jnp.exp(jnp.arange(D, dtype=jnp.float32) * (-math.log(10000.0) / D))
    dt_row = jnp.tile(div_term, B * k).reshape(1, W)
    off = jnp.repeat(jnp.arange(k, dtype=jnp.float32), L).reshape(1, W)
    ph_row = off * dt_row + jnp.float32(_QUARTER_PI)

    x2d = x.reshape(R, W)                          # contiguous, free reshape
    pos_arr = jnp.asarray([pos], dtype=jnp.int32)

    tile_bytes = tr * tl * itemsize
    vmem_limit = int(min(64 * 1024 * 1024,
                         max(32 * 1024 * 1024, 4 * tile_bytes + 8 * 1024 * 1024)))

    out2d = pl.pallas_call(
        functools.partial(_pe_add_kernel, fold=k),
        out_shape=jax.ShapeDtypeStruct((R, W), x.dtype),
        grid_spec=pltpu.PrefetchScalarGridSpec(
            num_scalar_prefetch=1,
            grid=grid,
            in_specs=[
                pl.BlockSpec((tr, tl), lambda j, i, _: (i, j)),   # x tile
                pl.BlockSpec((1, tl), lambda j, i, _: (0, j)),    # dt row (constant over inner axis)
                pl.BlockSpec((1, tl), lambda j, i, _: (0, j)),    # phase row
            ],
            out_specs=pl.BlockSpec((tr, tl), lambda j, i, _: (i, j)),
        ),
        compiler_params=pltpu.CompilerParams(
            dimension_semantics=("parallel", "parallel"),
            vmem_limit_bytes=vmem_limit,
        ),
        cost_estimate=pl.CostEstimate(
            flops=4 * R * W,
            transcendentals=R * W,
            bytes_accessed=2 * R * W * itemsize + 8 * W,
        ),
    )(pos_arr, x2d, dt_row, ph_row)
    return out2d.reshape(S, B, D)


def _reference(x, pos=0, max_len=5000):
    """Pure-JAX mirror of the PyTorch module (eval mode)."""
    S, _, D = x.shape
    position = jnp.arange(max_len, dtype=jnp.float32)[:, None]
    div_term = jnp.exp(jnp.arange(D, dtype=jnp.float32) * (-math.log(10000.0) / D))
    pe = jnp.sin(position * div_term) + jnp.cos(position * div_term)   # (max_len, D)
    pe = pe[:, None, :]                                                # (max_len, 1, D)
    return x + pe[pos:pos + S]


if __name__ == "__main__":
    key = jax.random.PRNGKey(0)
    k1, k2, k3 = jax.random.split(key, 3)

    # 1) Small-L path: B*D = 64 < 128 -> rows folded into lanes (k=2 -> 128 lanes).
    x1 = jax.random.normal(k1, (8, 2, 32), dtype=jnp.float32)
    o1 = jax.block_until_ready(positional_encoding(x1, pos=3))
    r1 = _reference(x1, pos=3)
    assert o1.shape == x1.shape and o1.dtype == x1.dtype
    assert jnp.allclose(o1, r1, atol=2e-5, rtol=1e-5), "mismatch (fold path)"

    # 2) Multi-block grid: ragged row tiles + lane tiling (forced small tiles),
    #    larger pos so angle-magnitude rounding is exercised.
    x2 = jax.random.normal(k2, (40, 4, 64), dtype=jnp.float32)    # L = 256
    o2 = jax.block_until_ready(positional_encoding(x2, pos=100, tile_override=(16, 128)))
    r2 = _reference(x2, pos=100)
    assert jnp.allclose(o2, r2, atol=2e-4, rtol=1e-4), "mismatch (tiled path)"

    # 3) bf16 input: dtype-aware sublane rounding, pe cast-then-add semantics.
    x3 = jax.random.normal(k3, (32, 2, 128), dtype=jnp.bfloat16)  # L = 256
    o3 = jax.block_until_ready(positional_encoding(x3, pos=17))
    r3 = _reference(x3, pos=17)                                    # promoted to f32
    assert o3.dtype == x3.dtype
    assert jnp.allclose(o3.astype(jnp.float32), r3, atol=0.1, rtol=0.05), "mismatch (bf16)"

    print("KERNEL_OK")
</pallas_src>

<mosaic_0001>
module attributes {stable_mosaic.version = 11 : i64} {
  func.func @_pe_add_kernel(%arg0: i32, %arg1: i32, %arg2: memref<1xi32, #tpu.memory_space<smem>>, %arg3: memref<4x128xf32, #tpu.memory_space<vmem>>, %arg4: memref<1x128xf32, #tpu.memory_space<vmem>>, %arg5: memref<1x128xf32, #tpu.memory_space<vmem>>, %arg6: memref<4x128xf32, #tpu.memory_space<vmem>>) attributes {dimension_semantics = [#tpu.dimension_semantics<parallel>, #tpu.dimension_semantics<parallel>], iteration_bounds = array<i64: 1, 1>, scalar_prefetch = 1 : i64, scratch_operands = 0 : i64, tpu.core_type = #tpu.core_type<tc>, window_params = [{transform_indices = @transform_0, window_bounds = array<i64: 4, 128>}, {transform_indices = @transform_1, window_bounds = array<i64: 1, 128>}, {transform_indices = @transform_2, window_bounds = array<i64: 1, 128>}, {transform_indices = @transform_3, window_bounds = array<i64: 4, 128>}]} {
    %c4_i32 = arith.constant 4 : i32
    %0 = arith.muli %arg1, %c4_i32 : i32
    %1 = tpu.iota {dimensions = array<i32: 0>} : vector<4x1xi32>
    %2 = vector.broadcast %0 : i32 to vector<4x1xi32>
    %3 = arith.addi %1, %2 : vector<4x1xi32>
    %c2_i32 = arith.constant 2 : i32
    %4 = vector.broadcast %c2_i32 : i32 to vector<4x1xi32>
    %5 = arith.muli %3, %4 : vector<4x1xi32>
    %c0 = arith.constant 0 : index
    %6 = memref.load %arg2[%c0] : memref<1xi32, #tpu.memory_space<smem>>
    %7 = vector.broadcast %6 : i32 to vector<4x1xi32>
    %8 = arith.addi %5, %7 : vector<4x1xi32>
    %9 = arith.sitofp %8 : vector<4x1xi32> to vector<4x1xf32>
    %c0_0 = arith.constant 0 : index
    %c0_1 = arith.constant 0 : index
    %10 = vector.load %arg4[%c0_0, %c0_1] : memref<1x128xf32, #tpu.memory_space<vmem>>, vector<1x128xf32>
    %11 = vector.broadcast %9 : vector<4x1xf32> to vector<4x128xf32>
    %12 = vector.broadcast %10 : vector<1x128xf32> to vector<4x128xf32>
    %13 = arith.mulf %11, %12 : vector<4x128xf32>
    %c0_2 = arith.constant 0 : index
    %c0_3 = arith.constant 0 : index
    %14 = vector.load %arg5[%c0_2, %c0_3] : memref<1x128xf32, #tpu.memory_space<vmem>>, vector<1x128xf32>
    %15 = vector.broadcast %14 : vector<1x128xf32> to vector<4x128xf32>
    %16 = arith.addf %13, %15 : vector<4x128xf32>
    %17 = math.sin %16 : vector<4x128xf32>
    %cst = arith.constant 1.41421354 : f32
    %18 = vector.broadcast %cst : f32 to vector<4x128xf32>
    %19 = arith.mulf %18, %17 : vector<4x128xf32>
    %c0_4 = arith.constant 0 : index
    %c0_5 = arith.constant 0 : index
    %20 = vector.load %arg3[%c0_4, %c0_5] : memref<4x128xf32, #tpu.memory_space<vmem>>, vector<4x128xf32>
    %21 = arith.addf %20, %19 : vector<4x128xf32>
    %c0_6 = arith.constant 0 : index
    %c0_7 = arith.constant 0 : index
    %22 = vector.load %arg6[%c0_6, %c0_7] : memref<4x128xf32, #tpu.memory_space<vmem>>, vector<4x128xf32>
    tpu.vector_store %arg6[%c0_6, %c0_7], %21 {strides = array<i32>} : memref<4x128xf32, #tpu.memory_space<vmem>>, vector<4x128xf32>,
    return
  }
  func.func @transform_0(%arg0: i32, %arg1: i32, %arg2: memref<1xi32, #tpu.memory_space<smem>>) -> (i32, i32) {
    %c0_i32 = arith.constant 0 : i32
    return %arg1, %arg0 : i32, i32
  }
  func.func @transform_1(%arg0: i32, %arg1: i32, %arg2: memref<1xi32, #tpu.memory_space<smem>>) -> (i32, i32) {
    %c0_i32 = arith.constant 0 : i32
    %c0_i32_0 = arith.constant 0 : i32
    return %c0_i32, %arg0 : i32, i32
  }
  func.func @transform_2(%arg0: i32, %arg1: i32, %arg2: memref<1xi32, #tpu.memory_space<smem>>) -> (i32, i32) {
    %c0_i32 = arith.constant 0 : i32
    %c0_i32_0 = arith.constant 0 : i32
    return %c0_i32, %arg0 : i32, i32
  }
  func.func @transform_3(%arg0: i32, %arg1: i32, %arg2: memref<1xi32, #tpu.memory_space<smem>>) -> (i32, i32) {
    %c0_i32 = arith.constant 0 : i32
    return %arg1, %arg0 : i32, i32
  }
}

</mosaic_0001>

<bundles_post_ra>
// kernel: tpu_custom_call.1
= control target key start
LH: loop header
LB: loop body
LE: loop exit
PB: predicated region body
PF: predicated region fallthrough
CT: control target
= control target key end

     0   :  { %10 = vsyncpa [#allocation5], 0  ;;  %s313_s0 = inlined_call_operand.<no memory space> [shape: s32[1], index: 0, kind: input, shape index: {}]   ;;  %s314_s1 = inlined_call_operand.hbm [shape: f32[4,128], index: 1, kind: input, shape index: {}]   ;;  %s315_s2 = inlined_call_operand.vmem [shape: f32[1,128], index: 2, kind: input, shape index: {}]   ;;  %s316_s3 = inlined_call_operand.vmem [shape: f32[1,128], index: 3, kind: input, shape index: {}]   ;;  %s317_s4 = inlined_call_operand.hbm [shape: f32[4,128], index: 4, kind: output, shape index: {}]  }
   0x1   :  { %11 = vsyncpa [#allocation6], 0  ;;  %s244_s15 = smov [#allocation4]  }
   0x2   :  { %s18_s16 = sshll.u32 %s244_s15, 4  ;;  %s19_s16 = int_to_ptr.vmem [resolvable:$true] %s18_s16 }
   0x3   :  { %s208_s17 = scalar_lea.vmem %s19_s16, 64  ;;  %p213_p1 = scmp.lt.s32.totalorder %s19_s16, %s19_s16 }
   0x4   :  { %p209_p0 = scmp.ne.s32.totalorder %s19_s16, %s208_s17  ;;  %p214_p2 = scmp.lt.s32.totalorder %s208_s17, %s208_s17 }
   0x6   :  { %p215_p3 = por %p214_p2, %p213_p1 }
   0x8   :  { %p216_p4 = pnand %p215_p3, %p209_p0 }
   0xa   :  { %219 = shalt.err (!%p216_p4)
}
   0xb   :  { %21 = dma.hbm_to_vmem [thread:$0]  %s314_s1, 64, %s19_s16, [#allocation5]  }
   0xc   :  { %240 = dma.done.wait [#allocation5], 64  }
   0xd   :  { %241 = vsyncadd [#allocation5], 4294967232  ;;  %v30_v0 = vlaneseq  ;;  %v36_v2 = vstv %s313_s0  ;;  %v178_v5 = vld [vmem:[%s315_s2] ss:$0 sm:$0xff]  ;;  %v245_v21 = vmov 683565275  }
   0xe   :  { %v179_v7 = vld [vmem:[%s316_s3] ss:$0 sm:$0xff]  ;;  %v246_v23 = vmov 2475754826   ;;  %v247_v25 = vmov 2131351028  }
   0xf   :  { %v31_v1 = vshrl.u32 %v30_v0, 7  ;;  %v248_v27 = vmov 2102212464   ;;  %v249_v29 = vmov 920167782   ;;  %s251_s0 = smov [#allocation7]  }
  0x10   :  { %v250_v36 = vmov 1326507024   ;;  %s169_s1 = sshll.u32 %s251_s0, 4  ;;  %s170_s1 = int_to_ptr.vmem [resolvable:$true] %s169_s1 }
  0x11   :  { %v34_v3 = vmul.u32 2, %v31_v1  ;;  %s220_s2 = scalar_lea.vmem %s170_s1, 64  ;;  %p225_p6 = scmp.lt.s32.totalorder %s170_s1, %s170_s1 }
  0x12   :  { %p221_p5 = scmp.ne.s32.totalorder %s170_s1, %s220_s2  ;;  %p226_p7 = scmp.lt.s32.totalorder %s220_s2, %s220_s2 }
  0x13   :  { %v37_v4 = vadd.s32 %v36_v2, %v34_v3 }
  0x14   :  { %p227_p8 = por %p226_p7, %p225_p6 }
  0x15   :  { %v38_v6 = vcvt.s32.f32 %v37_v4 }
  0x16   :  { %p228_p9 = pnand %p227_p8, %p221_p5 }
  0x17   :  { %v46_v8 = vmul.f32 %v178_v5, %v38_v6 }
  0x19   :  { %v289_v9 = vadd.f32 %v179_v7, %v46_v8 }
  0x1b   :  { %v58_v10 = vand.u32 2139095040, %v289_v9  ;;  %v55_v12 = vand.u32 2147483647, %v289_v9  ;;  %vm57_vm7 = vcmp.lt.s32.totalorder %v289_v9, 0  ;;  %vm147_vm12 = vweird.f32 %v289_v9 }
  0x1d   :  { %v59_v11 = vshrl.u32 %v58_v10, 23  ;;  %v62_v15 = vand.u32 8388607, %v55_v12  ;;  %vm56_vm8 = vcmp.le.f32.partialorder %v55_v12, 0.7853982 }
  0x1f   :  { %v180_v13 = vadd.s32 4294967169, %v59_v11  ;;  %v63_v18 = vor.u32 8388608, %v62_v15 }
  0x21   :  { %v65_v14 = vadd.s32 1, %v180_v13  ;;  %v103_v38 = vshll.u32 %v63_v18, 8 }
  0x23   :  { %vm66_vm0 = vcmp.gt.s32.totalorder %v65_v14, 0 }
  0x24   :  { %v67_v16 = vsel %vm66_vm0, %v65_v14, 0 }
  0x25   :  { %v69_v17 = vand.u32 31, %v67_v16  ;;  %v68_v19 = vshrl.u32 %v67_v16, 5 }
  0x27   :  { %v70_v20 = vsub.s32 32, %v69_v17  ;;  %v72_v22 = vshll.u32 %v245_v21, %v69_v17  ;;  %v75_v24 = vshll.u32 %v246_v23, %v69_v17  ;;  %v78_v26 = vshll.u32 %v247_v25, %v69_v17 }
  0x28   :  { %v81_v28 = vshll.u32 %v248_v27, %v69_v17  ;;  %v84_v30 = vshll.u32 %v249_v29, %v69_v17  ;;  %vm87_vm1 = vcmp.lt.s32.totalorder %v68_v19, 1  ;;  %vm90_vm2 = vcmp.lt.s32.totalorder %v68_v19, 4 }
  0x29   :  { %v71_v31 = vshrl.u32 %v245_v21, %v70_v20  ;;  %v73_v32 = vshrl.u32 %v246_v23, %v70_v20  ;;  %v76_v33 = vshrl.u32 %v247_v25, %v70_v20  ;;  %v79_v34 = vshrl.u32 %v248_v27, %v70_v20 }
  0x2a   :  { %v82_v35 = vshrl.u32 %v249_v29, %v70_v20  ;;  %v85_v37 = vshrl.u32 %v250_v36, %v70_v20  ;;  %vm88_vm3 = vcmp.lt.s32.totalorder %v68_v19, 2  ;;  %vm89_vm4 = vcmp.lt.s32.totalorder %v68_v19, 3 }
  0x2b   :  { %v74_v39 = vor.u32 %v73_v32, %v72_v22  ;;  %v77_v40 = vor.u32 %v76_v33, %v75_v24  ;;  %v80_v41 = vor.u32 %v79_v34, %v78_v26 }
  0x2c   :  { %v83_v42 = vor.u32 %v82_v35, %v81_v28  ;;  %v86_v43 = vor.u32 %v85_v37, %v84_v30 }
  0x2d   :  { %v91_v44 = vsel %vm87_vm1, %v71_v31, %v74_v39  ;;  %v92_v45 = vsel %vm90_vm2, %v80_v41, 2102212464  ;;  %v95_v46 = vsel %vm87_vm1, %v74_v39, %v77_v40  ;;  %v99_v47 = vsel %vm87_vm1, %v77_v40, %v80_v41 }
  0x2e   :  { %v93_v48 = vsel %vm89_vm4, %v77_v40, %v92_v45  ;;  %v96_v49 = vsel %vm90_vm2, %v83_v42, 920167782  ;;  %v100_v50 = vsel %vm90_vm2, %v86_v43, 1326507024 }
  0x2f   :  { %v97_v51 = vsel %vm89_vm4, %v80_v41, %v96_v49  ;;  %v101_v52 = vsel %vm89_vm4, %v83_v42, %v100_v50  ;;  %v94_v53 = vsel %vm88_vm3, %v91_v44, %v93_v48 }
  0x30   :  { %v98_v54 = vsel %vm88_vm3, %v95_v46, %v97_v51  ;;  %v102_v55 = vsel %vm88_vm3, %v99_v47, %v101_v52  ;;  %v110_v60 = vmul.u32 %v103_v38, %v94_v53 }
  0x31   :  { %v295_v56 = vmul.u32.u64.low %v103_v38, %v102_v55  ;;  %v296_v57 = vmul.u32.u64.high %v103_v38, %v102_v55, %v295_v56  ;;  %v298_v58 = vmul.u32.u64.low %v103_v38, %v98_v54  ;;  %v299_v59 = vmul.u32.u64.high %v103_v38, %v98_v54, %v298_v58  ;;  %v160_v38 = vld [vmem:[#allocation4] sm:$0xf] }
  0x33   :  { %vm112_vm5 = vc.u32 %v296_v57, %v298_v58  ;;  %v113_v61 = vadd.s32 1, %v299_v59  ;;  %v111_v8 = vadd.s32 %v298_v58, %v296_v57 }
  0x35   :  { %v114_v62 = vsel %vm112_vm5, %v113_v61, %v299_v59 }
  0x36   :  { %v115_v63 = vadd.s32 %v114_v62, %v110_v60 }
  0x38   :  { %v116_v0 = vadd.s32 536870912, %v115_v63 }
  0x3a   :  { %v117_v1 = vshrl.u32 %v116_v0, 30 }
  0x3c   :  { %v118_v2 = vshll.u32 %v117_v1, 30  ;;  %v141_v23 = vsub.s32 4, %v117_v1 }
  0x3e   :  { %v119_v3 = vsub.s32 %v115_v63, %v118_v2  ;;  %v142_v26 = vsel %vm57_vm7, %v141_v23, %v117_v1 }
  0x3f   :  { %v144_v28 = vsel %vm56_vm8, 0, %v142_v26 }
  0x40   :  { %v121_v4 = vsub.s32 0, %v119_v3  ;;  %v148_v29 = vadd.s32 3, %v144_v28 }
  0x42   :  { %v181_v5 = vmin.u32 %v121_v4, %v119_v3  ;;  %v149_v30 = vand.u32 3, %v148_v29 }
  0x44   :  { %v123_v6 = vclz %v181_v5  ;;  %vm154_vm9 = vcmp.eq.s32.totalorder %v149_v30, 2  ;;  %vm151_vm10 = vcmp.eq.s32.totalorder %v149_v30, 0  ;;  %vm150_vm11 = vcmp.lt.s32.totalorder %v149_v30, 2 }
  0x46   :  { %v182_v7 = vadd.s32 4294967294, %v123_v6 }
  0x48   :  { %vm183_vm6 = vcmp.lt.s32.totalorder %v182_v7, 0 }
  0x49   :  { %v126_v10 = vsel %vm183_vm6, 0, %v182_v7 }
  0x4a   :  { %v127_v11 = vsub.s32 32, %v126_v10  ;;  %v128_v13 = vshll.u32 %v119_v3, %v126_v10  ;;  %v131_v14 = vsub.s32 4294967266, %v126_v10 }
  0x4c   :  { %v129_v15 = vshrl.u32 %v111_v8, %v127_v11  ;;  %v132_v16 = vadd.s32 127, %v131_v14 }
  0x4e   :  { %v130_v17 = vor.u32 %v129_v15, %v128_v13  ;;  %v133_v18 = vshll.u32 %v132_v16, 23 }
  0x50   :  { %v134_v19 = vor.u32 4788187, %v133_v18  ;;  %v137_v20 = vcvt.s32.f32 %v130_v17 }
  0x52   :  { %v135_v21 = vand.u32 2147483647, %v134_v19 }
  0x54   :  { %v138_v22 = vmul.f32 %v137_v20, %v135_v21 }
  0x56   :  { %v139_v24 = vxor.u32 2147483648, %v138_v22 }
  0x58   :  { %v140_v25 = vsel %vm57_vm7, %v139_v24, %v138_v22 }
  0x59   :  { %v143_v27 = vsel %vm56_vm8, %v289_v9, %v140_v25 }
  0x5a   :  { %196 = vcosq.f32 %v143_v27 }
  0x5b   :  { %198 = vsinq.f32 %v143_v27 }
  0x67   :  { %v197_v31 = vpop.eup %196 }
  0x68   :  { %v199_v32 = vpop.eup %198  ;;  %v155_v33 = vxor.u32 2147483648, %v197_v31 }
  0x69   :  { %v152_v34 = vxor.u32 2147483648, %v199_v32 }
  0x6a   :  { %v156_v12 = vsel %vm154_vm9, %v155_v33, %v199_v32 }
  0x6b   :  { %v153_v35 = vsel %vm151_vm10, %v197_v31, %v152_v34 }
  0x6c   :  { %v157_v36 = vsel %vm150_vm11, %v153_v35, %v156_v12 }
  0x6d   :  { %v158_v37 = vsel %vm147_vm12, nan, %v157_v36 }
  0x6e   :  { %v159_v39 = vmul.f32 1.4142135, %v158_v37 }
  0x70   :  { %v161_v40 = vadd.f32 %v160_v38, %v159_v39 }
  0x72   :  { %162 = vst [vmem:[#allocation7] sm:$0xf] %v161_v40 }
  0x73   :  { %231 = shalt.err (!%p228_p9)
}
  0x74   :  { %172 = dma.vmem_to_hbm [thread:$0]  %s170_s1, 64, %s317_s4, [#allocation6]  }
  0x75   :  { %242 = dma.done.wait [#allocation6], 64  }
  0x76   :  { %243 = vsyncadd [#allocation6], 4294967232 }
  0x77   :  { %176 = vsyncpa [#allocation5], 1 }
  0x78   :  { %177 = vsyncpa [#allocation6], 1 }

</bundles_post_ra>
